<compile_context>
chip_gen: v5e
topology: v5e:2x2
jax: 0.10.0
libtpu: 0.0.40
codegen_flags: <defaults>
</compile_context>

<pallas_src>
import numpy as np
import jax
import jax.numpy as jnp
from jax import lax
from jax.experimental import pallas as pl
from jax.experimental.pallas import tpu as pltpu


def _round_up(a, b):
    return (a + b - 1) // b * b


def _embed_gather_kernel(idx_ref, table_ref, out_ref):
    # idx_ref:   (Np,)  int32, SMEM (scalar-prefetched flattened indices)
    # table_ref: (V, D) f32,   VMEM-resident full embedding table
    # out_ref:   (TN, D) f32,  output tile for this grid step
    block = out_ref.shape[0]
    base = pl.program_id(0) * block

    def body(r, carry):
        row = idx_ref[base + r]                                   # scalar SMEM read
        out_ref[pl.ds(r, 1), :] = table_ref[pl.ds(row, 1), :]     # (1, D) row gather
        return carry

    lax.fori_loop(0, block, body, 0)


def features_embedding(x, offsets, table, *, block_rows=256):
    """Pallas equivalent of FeaturesEmbedding.forward.

    x:       (B, F) int32 per-field categorical indices
    offsets: (F,)   int32 cumulative field offsets
    table:   (V, D) float32 embedding table, V = sum(field_dims)
    returns  (B, F, D) float32  ==  table[x + offsets]
    """
    B, F = x.shape
    V, D = table.shape
    N = B * F

    # Offset shift once in the wrapper; clamp makes out-of-range semantics
    # explicit (PyTorch would raise; valid inputs are unaffected).
    idx = (x.astype(jnp.int32) + offsets.astype(jnp.int32)[None, :]).reshape(N)
    idx = jnp.clip(idx, 0, V - 1)

    # Large row blocks amortize per-grid-step overhead; never exceed problem size.
    block_rows = max(8, min(_round_up(block_rows, 8), _round_up(N, 8)))
    Np = _round_up(N, block_rows)
    if Np != N:
        idx = jnp.pad(idx, (0, Np - N))   # padded rows gather row 0; sliced off below

    itemsize = table.dtype.itemsize
    table_bytes = V * D * itemsize
    out_tile_bytes = block_rows * D * itemsize
    vmem_limit = int(min(max(table_bytes + 4 * out_tile_bytes + (4 << 20), 32 << 20),
                         64 << 20))

    out_flat = pl.pallas_call(
        _embed_gather_kernel,
        out_shape=jax.ShapeDtypeStruct((Np, D), table.dtype),
        grid_spec=pltpu.PrefetchScalarGridSpec(
            num_scalar_prefetch=1,                 # idx -> SMEM
            grid=(Np // block_rows,),
            in_specs=[
                # Whole table resident in VMEM, single-buffered (not pipelined).
                pl.BlockSpec(memory_space=pltpu.MemorySpace.VMEM),
            ],
            out_specs=pl.BlockSpec((block_rows, D), lambda i, idx_ref: (i, 0)),
        ),
        compiler_params=pltpu.CompilerParams(
            dimension_semantics=("parallel",),
            vmem_limit_bytes=vmem_limit,
        ),
        cost_estimate=pl.CostEstimate(
            flops=0,
            transcendentals=0,
            bytes_accessed=int(table_bytes + Np * 4 + 2 * Np * D * itemsize),
        ),
    )(idx, table)

    return out_flat[:N].reshape(B, F, D)


if __name__ == "__main__":
    key = jax.random.PRNGKey(0)

    # Synthetic module config (small, consistent with the PyTorch __init__).
    field_dims = np.array([6, 4, 10, 12], dtype=np.int32)   # F = 4 fields
    embed_dim = 32
    batch = 8

    vocab = int(field_dims.sum())                            # V = 32
    offsets_np = np.array((0, *np.cumsum(field_dims)[:-1]), dtype=np.int32)
    offsets = jnp.asarray(offsets_np)

    # Deterministic xavier_uniform init for the embedding table.
    k_w, k_x = jax.random.split(key)
    bound = float(np.sqrt(6.0 / (embed_dim + vocab)))
    table = jax.random.uniform(
        k_w, (vocab, embed_dim), dtype=jnp.float32, minval=-bound, maxval=bound
    )

    # Deterministic per-field indices: x[:, f] in [0, field_dims[f]).
    u = jax.random.uniform(k_x, (batch, field_dims.shape[0]))
    x = jnp.floor(u * jnp.asarray(field_dims, jnp.float32)).astype(jnp.int32)

    out = features_embedding(x, offsets, table)
    out = jax.block_until_ready(out)

    # Pure-JAX reference (mirrors the PyTorch forward exactly).
    ref = table[(x + offsets[None, :]).reshape(-1)].reshape(
        batch, field_dims.shape[0], embed_dim
    )
    assert out.shape == (batch, field_dims.shape[0], embed_dim)
    assert out.dtype == jnp.float32
    np.testing.assert_allclose(np.asarray(out), np.asarray(ref), rtol=0, atol=0)

    print("KERNEL_OK")
</pallas_src>

<mosaic_0001>
module attributes {stable_mosaic.version = 11 : i64} {
  func.func @_embed_gather_kernel(%arg0: i32, %arg1: memref<32xi32, #tpu.memory_space<smem>>, %arg2: memref<32x32xf32, #tpu.memory_space<vmem>>, %arg3: memref<32x32xf32, #tpu.memory_space<vmem>>) attributes {dimension_semantics = [#tpu.dimension_semantics<parallel>], iteration_bounds = array<i64: 1>, scalar_prefetch = 1 : i64, scratch_operands = 0 : i64, tpu.core_type = #tpu.core_type<tc>, window_params = [{pipeline_mode = #tpu.pipeline_mode<synchronous>, transform_indices = @transform_0, window_bounds = array<i64: 32, 32>}, {transform_indices = @transform_1, window_bounds = array<i64: 32, 32>}]} {
    %c32_i32 = arith.constant 32 : i32
    %0 = arith.muli %arg0, %c32_i32 : i32
    %c0_i32 = arith.constant 0 : i32
    %c32_i32_0 = arith.constant 32 : i32
    %1 = arith.addi %c0_i32, %c32_i32_0 : i32
    %c1_i32 = arith.constant 1 : i32
    scf.for %arg4 = %c0_i32 to %1 step %c1_i32  : i32 {
      %2 = arith.addi %0, %arg4 : i32
      %3 = arith.index_cast %2 : i32 to index
      %4 = memref.load %arg1[%3] : memref<32xi32, #tpu.memory_space<smem>>
      %5 = arith.index_cast %4 : i32 to index
      %c0 = arith.constant 0 : index
      %6 = vector.load %arg2[%5, %c0] : memref<32x32xf32, #tpu.memory_space<vmem>>, vector<1x32xf32>
      %7 = arith.index_cast %arg4 : i32 to index
      %c0_2 = arith.constant 0 : index
      %8 = vector.load %arg3[%7, %c0_2] : memref<32x32xf32, #tpu.memory_space<vmem>>, vector<1x32xf32>
      tpu.vector_store %arg3[%7, %c0_2], %6 {strides = array<i32>} : memref<32x32xf32, #tpu.memory_space<vmem>>, vector<1x32xf32>,
    }
    %c32_i32_1 = arith.constant 32 : i32
    return
  }
  func.func @transform_0(%arg0: i32, %arg1: memref<32xi32, #tpu.memory_space<smem>>) -> (i32, i32) {
    %c0_i32 = arith.constant 0 : i32
    %c0_i32_0 = arith.constant 0 : i32
    %c0_i32_1 = arith.constant 0 : i32
    return %c0_i32, %c0_i32_0 : i32, i32
  }
  func.func @transform_1(%arg0: i32, %arg1: memref<32xi32, #tpu.memory_space<smem>>) -> (i32, i32) {
    %c0_i32 = arith.constant 0 : i32
    %c0_i32_0 = arith.constant 0 : i32
    return %arg0, %c0_i32 : i32, i32
  }
}

</mosaic_0001>

<bundles_post_ra>
// kernel: tpu_custom_call.1
= control target key start
LH: loop header
LB: loop body
LE: loop exit
PB: predicated region body
PF: predicated region fallthrough
CT: control target
= control target key end

     0   :  { %s161_s12 = smov [#allocation3]   ;;  %s190_s0 = inlined_call_operand.hbm [shape: s32[32], index: 0, kind: input, shape index: {}]   ;;  %s191_s1 = inlined_call_operand.hbm [shape: f32[32,32], index: 1, kind: input, shape index: {}]   ;;  %s192_s2 = inlined_call_operand.hbm [shape: f32[32,32], index: 2, kind: output, shape index: {}]  }
   0x1   :  { %s8_s11 = sshll.u32 %s190_s0, 4  ;;  %s9_s11 = int_to_ptr.hbm [resolvable:$true] %s8_s11 }
   0x2   :  { %11 = dma.hbm_to_smem %s9_s11, 16, %s161_s12, [#allocation2] }
   0x3   :  { %151 = dma.done.wait [#allocation2], 16 }
   0x4   :  { %152 = vsyncadd [#allocation2], 4294967280 }
   0x5   :  { %14 = sfence }
   0x6   :  { %15 = vsyncpa [#allocation5], 0 }
   0x7   :  { %16 = vsyncpa [#allocation6], 0  ;;  %s21_s15 = sshll.u32 %s191_s1, 4  ;;  %s162_s16 = smov [#allocation4]   ;;  %s22_s15 = int_to_ptr.hbm [resolvable:$true] %s21_s15 }
   0x8   :  { %s23_s17 = sshll.u32 %s162_s16, 4  ;;  %s163_s18 = smov 128   ;;  %s24_s17 = int_to_ptr.vmem [resolvable:$true] %s23_s17 }
   0x9   :  { %s164_s19 = smov 8  }
   0xa   :  { %29 = dma.hbm_to_vmem [thread:$0]  %s22_s15, 512, %s24_s17, [#allocation5], %s163_s18, %s163_s18, %s164_s19  }
   0xb   :  { %153 = dma.done.wait [#allocation5], 512  }
   0xc   :  { %154 = vsyncadd [#allocation5], 4294966784  ;;  %s157_s0 = smov 0  }
   0xd LB: > { %s42_s20 = sld [smem:[#allocation3 + %s159_s0]]  ;;  %vm46_vm0 = vcmask 253952   ;;  %s45_s22 = scalar_lea.vmem [#allocation7], %s159_s0  ;;  %s159_s0 = sphi %s157_s0, %s40_s0  }
   0xe   : > { %s40_s0 = sadd.s32 1, %s159_s0  }
   0xf   : > { %p37_p0 = scmp.ge.s32.totalorder %s40_s0, 32  }
  0x10   :  { %s54_s24 = sshll.u32 (%p37_p0), %s192_s2, 4  ;;  %s165_s25 = smov (%p37_p0), [#allocation7]   ;;  %s55_s24 = int_to_ptr.hbm [resolvable:$true] %s54_s24 }
  0x11   :  { %39 = sbr.rel (!%p37_p0) target bundleno = 13 (0xd), region = 37  ;;  %s52_s26 = sshll.u32 (%p37_p0), %s165_s25, 4  ;;  %s53_s26 = int_to_ptr.vmem [resolvable:$true] %s52_s26 }
  0x13   : > { %s43_s21 = scalar_lea.vmem [#allocation4], %s42_s20 }
  0x14   : > { %v44_v0 = vld [vmem:[%s43_s21] sm:$0x1] }
  0x15   : > { %47 = vst.msk [vmem:[%s45_s22] sm:$0x1] %vm46_vm0, %v44_v0 }
  0x16   :  { %60 = dma.vmem_to_hbm [thread:$0]  %s53_s26, 512, %s55_s24, [#allocation6], %s163_s18, %s163_s18, %s164_s19  }
  0x17   :  { %155 = dma.done.wait [#allocation6], 512  }
  0x18   :  { %156 = vsyncadd [#allocation6], 4294966784 }
  0x19   :  { %65 = vsyncpa [#allocation5], 1 }
  0x1a   :  { %66 = vsyncpa [#allocation6], 1 }

</bundles_post_ra>
